<compile_context>
chip_gen: v5e
topology: v5e:2x2
jax: 0.10.0
libtpu: 0.0.40
codegen_flags: <defaults>
</compile_context>

<pallas_src>
import jax
import jax.numpy as jnp
from jax.experimental import pallas as pl
from jax.experimental.pallas import tpu as pltpu

EPS = 1e-3  # matches BatchNorm2d(24, eps=0.001)


def _bn_add_conv_kernel(x21_ref, x30_ref, gb_ref, w_ref, out_ref):
    x = x21_ref[...]                                    # (Cin, P) f32, channel-major
    inv_p = jnp.float32(1.0 / x.shape[1])

    # ---- BatchNorm2d, training mode: single-pass batch stats (biased var) ----
    s1 = jnp.sum(x, axis=1, keepdims=True)              # (Cin, 1)
    s2 = jnp.sum(x * x, axis=1, keepdims=True)          # (Cin, 1)
    mean = s1 * inv_p
    var = s2 * inv_p - mean * mean                      # biased variance
    inv_std = jax.lax.rsqrt(var + EPS)

    # gamma/beta arrive packed as one (Cin, 2) operand: col 0 = gamma, col 1 = beta.
    gb = gb_ref[...]
    gamma = gb[:, 0:1]                                  # (Cin, 1)
    beta = gb[:, 1:2]                                   # (Cin, 1)

    # Fold affine into per-channel scale/shift (O(Cin) work).
    scale = gamma * inv_std                             # (Cin, 1)
    shift = beta - mean * scale                         # (Cin, 1)

    # ---- normalize + affine + residual add: 1 mul + 2 adds per element ----
    z = x * scale + shift + x30_ref[...]                # (Cin, P)

    # ---- 1x1 conv == channel matmul on the MXU (bf16 operands, f32 acc) ----
    out_ref[...] = jnp.dot(
        w_ref[...],                                     # already bf16 (pre-cast in wrapper)
        z.astype(jnp.bfloat16),
        preferred_element_type=jnp.float32,
    )                                                    # (Cout, P) f32


def bn_add_conv(x21, x30, gamma, beta, conv_w):
    """x21, x30: (N, Cin, H, W); gamma/beta: (Cin,); conv_w: (Cout, Cin, 1, 1)."""
    N, Cin, H, W = x21.shape
    Cout = conv_w.shape[0]
    P = N * H * W

    # NCHW -> channel-major (Cin, P). Free reshape when N == 1.
    if N == 1:
        x21_2d = x21.reshape(Cin, P).astype(jnp.float32)
        x30_2d = x30.reshape(Cin, P).astype(jnp.float32)
    else:
        x21_2d = jnp.transpose(x21, (1, 0, 2, 3)).reshape(Cin, P).astype(jnp.float32)
        x30_2d = jnp.transpose(x30, (1, 0, 2, 3)).reshape(Cin, P).astype(jnp.float32)

    # Pack gamma/beta into one (Cin, 2) operand: one fewer DMA + sem wait.
    gb_2d = jnp.stack(
        [gamma.astype(jnp.float32), beta.astype(jnp.float32)], axis=1
    )                                                       # (Cin, 2)

    # Pre-cast weight to bf16 in the wrapper (half the DMA, no in-kernel repack).
    w_2d = conv_w.reshape(Cout, Cin).astype(jnp.bfloat16)   # (Cout, Cin)

    # Advisory cost hint so XLA can overlap this tiny, overhead-bound call.
    bytes_accessed = (
        2 * Cin * P * 4        # x21, x30 (f32)
        + Cin * 2 * 4          # packed gamma/beta (f32)
        + Cout * Cin * 2       # weight (bf16)
        + Cout * P * 4         # output (f32)
    )
    cost = pl.CostEstimate(
        flops=2 * Cout * Cin * P + 4 * Cin * P,
        transcendentals=Cin,
        bytes_accessed=bytes_accessed,
    )

    vmem = pl.BlockSpec(memory_space=pltpu.MemorySpace.VMEM)
    out_2d = pl.pallas_call(
        _bn_add_conv_kernel,
        out_shape=jax.ShapeDtypeStruct((Cout, P), jnp.float32),
        in_specs=[vmem, vmem, vmem, vmem],
        out_specs=vmem,
        cost_estimate=cost,
    )(x21_2d, x30_2d, gb_2d, w_2d)

    # (Cout, P) -> NCHW. Free reshape when N == 1.
    if N == 1:
        return out_2d.reshape(1, Cout, H, W)
    return jnp.transpose(out_2d.reshape(Cout, N, H, W), (1, 0, 2, 3))


if __name__ == "__main__":
    key = jax.random.PRNGKey(0)
    k1, k2, k3, k4, k5 = jax.random.split(key, 5)

    N, Cin, H, W, Cout = 1, 24, 28, 28, 96
    x21 = jax.random.normal(k1, (N, Cin, H, W), dtype=jnp.float32)
    x30 = jax.random.normal(k2, (N, Cin, H, W), dtype=jnp.float32)

    # BatchNorm2d(24) affine params, Conv2d(24->96, 1x1, bias=False) weight.
    gamma = 1.0 + 0.1 * jax.random.normal(k3, (Cin,), dtype=jnp.float32)
    beta = 0.1 * jax.random.normal(k4, (Cin,), dtype=jnp.float32)
    conv_w = jax.random.normal(k5, (Cout, Cin, 1, 1), dtype=jnp.float32) * (1.0 / jnp.sqrt(Cin))

    out = bn_add_conv(x21, x30, gamma, beta, conv_w)
    jax.block_until_ready(out)
    assert out.shape == (N, Cout, H, W), out.shape
    print("KERNEL_OK")
</pallas_src>

<mosaic_0001>
module attributes {stable_mosaic.version = 11 : i64} {
  func.func @_bn_add_conv_kernel(%arg0: memref<24x784xf32, #tpu.memory_space<vmem>>, %arg1: memref<24x784xf32, #tpu.memory_space<vmem>>, %arg2: memref<24x2xf32, #tpu.memory_space<vmem>>, %arg3: memref<96x24xbf16, #tpu.memory_space<vmem>>, %arg4: memref<96x784xf32, #tpu.memory_space<vmem>>) attributes {dimension_semantics = [], scalar_prefetch = 0 : i64, scratch_operands = 0 : i64, tpu.core_type = #tpu.core_type<tc>} {
    %c0 = arith.constant 0 : index
    %c0_0 = arith.constant 0 : index
    %0 = vector.load %arg0[%c0, %c0_0] : memref<24x784xf32, #tpu.memory_space<vmem>>, vector<24x784xf32>
    %cst = arith.constant dense<0.000000e+00> : vector<24xf32>
    %1 = vector.multi_reduction <add>, %0, %cst [1] : vector<24x784xf32> to vector<24xf32>
    %2 = vector.shape_cast %1 : vector<24xf32> to vector<24x1xf32>
    %3 = arith.mulf %0, %0 : vector<24x784xf32>
    %cst_1 = arith.constant dense<0.000000e+00> : vector<24xf32>
    %4 = vector.multi_reduction <add>, %3, %cst_1 [1] : vector<24x784xf32> to vector<24xf32>
    %5 = vector.shape_cast %4 : vector<24xf32> to vector<24x1xf32>
    %cst_2 = arith.constant 0.00127551018 : f32
    %6 = vector.broadcast %cst_2 : f32 to vector<24x1xf32>
    %7 = arith.mulf %2, %6 : vector<24x1xf32>
    %cst_3 = arith.constant 0.00127551018 : f32
    %8 = vector.broadcast %cst_3 : f32 to vector<24x1xf32>
    %9 = arith.mulf %5, %8 : vector<24x1xf32>
    %10 = arith.mulf %7, %7 : vector<24x1xf32>
    %11 = arith.subf %9, %10 : vector<24x1xf32>
    %cst_4 = arith.constant 1.000000e-03 : f32
    %12 = vector.broadcast %cst_4 : f32 to vector<24x1xf32>
    %13 = arith.addf %11, %12 : vector<24x1xf32>
    %14 = math.rsqrt %13 : vector<24x1xf32>
    %c0_5 = arith.constant 0 : index
    %c0_6 = arith.constant 0 : index
    %15 = vector.load %arg2[%c0_5, %c0_6] : memref<24x2xf32, #tpu.memory_space<vmem>>, vector<24x2xf32>
    %16 = vector.extract_strided_slice %15 {offsets = [0, 0], sizes = [24, 1], strides = [1, 1]} : vector<24x2xf32> to vector<24x1xf32>
    %17 = vector.extract_strided_slice %15 {offsets = [0, 1], sizes = [24, 1], strides = [1, 1]} : vector<24x2xf32> to vector<24x1xf32>
    %18 = arith.mulf %16, %14 : vector<24x1xf32>
    %19 = arith.mulf %7, %18 : vector<24x1xf32>
    %20 = arith.subf %17, %19 : vector<24x1xf32>
    %21 = vector.broadcast %18 : vector<24x1xf32> to vector<24x784xf32>
    %22 = arith.mulf %0, %21 : vector<24x784xf32>
    %23 = vector.broadcast %20 : vector<24x1xf32> to vector<24x784xf32>
    %24 = arith.addf %22, %23 : vector<24x784xf32>
    %c0_7 = arith.constant 0 : index
    %c0_8 = arith.constant 0 : index
    %25 = vector.load %arg1[%c0_7, %c0_8] : memref<24x784xf32, #tpu.memory_space<vmem>>, vector<24x784xf32>
    %26 = arith.addf %24, %25 : vector<24x784xf32>
    %c0_9 = arith.constant 0 : index
    %c0_10 = arith.constant 0 : index
    %27 = vector.load %arg3[%c0_9, %c0_10] : memref<96x24xbf16, #tpu.memory_space<vmem>>, vector<96x24xbf16>
    %28 = arith.truncf %26 : vector<24x784xf32> to vector<24x784xbf16>
    %cst_11 = arith.constant dense<0.000000e+00> : vector<96x784xf32>
    %29 = tpu.matmul %27, %28, %cst_11 {dimension_numbers = #tpu.dot_dimension_numbers<[1], [0], [0], [1], [0, 0, 1, 1], [], []>} : vector<96x24xbf16>, vector<24x784xbf16>, vector<96x784xf32> -> vector<96x784xf32>
    %c0_12 = arith.constant 0 : index
    %c0_13 = arith.constant 0 : index
    %30 = vector.load %arg4[%c0_12, %c0_13] : memref<96x784xf32, #tpu.memory_space<vmem>>, vector<96x784xf32>
    tpu.vector_store %arg4[%c0_12, %c0_13], %29 {strides = array<i32>} : memref<96x784xf32, #tpu.memory_space<vmem>>, vector<96x784xf32>,
    return
  }
}

</mosaic_0001>

<bundles_post_ra>
// kernel: tpu_custom_call.1
= control target key start
LH: loop header
LB: loop body
LE: loop exit
PB: predicated region body
PF: predicated region fallthrough
CT: control target
= control target key end

     0   :  { %9 = vsyncpa [#allocation3], 0  ;;  %s1335_s0 = inlined_call_operand.hbm [shape: f32[24,784], index: 0, kind: input, shape index: {}]   ;;  %s1336_s1 = inlined_call_operand.hbm [shape: f32[24,784], index: 1, kind: input, shape index: {}]   ;;  %s1337_s2 = inlined_call_operand.vmem [shape: f32[24,2], index: 2, kind: input, shape index: {}]   ;;  %s1338_s3 = inlined_call_operand.vmem [shape: bf16[96,24], index: 3, kind: input, shape index: {}]   ;;  %s1339_s4 = inlined_call_operand.hbm [shape: f32[96,784], index: 4, kind: output, shape index: {}]  }
   0x1   :  { %10 = vsyncpa [#allocation6], 0 }
   0x2   :  { %11 = vsyncpa [#allocation4], 0  ;;  %s16_s17 = sshll.u32 %s1335_s0, 4  ;;  %s981_s18 = smov [#allocation2]   ;;  %s17_s17 = int_to_ptr.hbm [resolvable:$true] %s16_s17 }
   0x3   :  { %s18_s19 = sshll.u32 %s981_s18, 4  ;;  %s29_s22 = sshll.u32 %s1336_s1, 4  ;;  %s19_s19 = int_to_ptr.vmem [resolvable:$true] %s18_s19  ;;  %s30_s22 = int_to_ptr.hbm [resolvable:$true] %s29_s22 }
   0x4   :  { %s982_s23 = smov 896   ;;  %s983_s24 = smov 56  }
   0x5   :  { %24 = dma.hbm_to_vmem [thread:$0]  %s17_s17, 2688, %s19_s19, [#allocation3], %s982_s23, %s982_s23, %s983_s24  }
   0x6   :  { %s984_s25 = smov [#allocation5]  }
   0x7   :  { %s31_s26 = sshll.u32 %s984_s25, 4  ;;  %s32_s26 = int_to_ptr.vmem [resolvable:$true] %s31_s26 }
   0x8   :  { %37 = dma.hbm_to_vmem [thread:$0]  %s30_s22, 2688, %s32_s26, [#allocation6], %s982_s23, %s982_s23, %s983_s24  }
   0x9   :  { %975 = dma.done.wait [#allocation3], 2688  }
   0xa   :  { %976 = vsyncadd [#allocation3], 4294964608 }
   0xb   :  { %977 = dma.done.wait [#allocation6], 2688  }
   0xc   :  { %978 = vsyncadd [#allocation6], 4294964608  ;;  %v1026_v0 = vld [vmem:[#allocation2 + $0x70] sm:$0xff]  ;;  %v1028_v1 = vld [vmem:[#allocation2 + $0x78] sm:$0xff]  ;;  %vm77_vm0 = vcmask 130048   ;;  %s986_s29 = smov 1  }
   0xd   :  { %v1030_v2 = vld [vmem:[#allocation2 + $0x80] sm:$0xff]  ;;  %v1032_v3 = vld [vmem:[#allocation2 + $0x88] sm:$0xff]  ;;  %v1034_v4 = vld [vmem:[#allocation2 + $0x90] sm:$0xff]  ;;  %v91_v5 = vadd.f32 %v1028_v1, %v1026_v0  ;;  %v114_v9 = vmul.f32 %v1026_v0, %v1026_v0  ;;  %v115_v10 = vmul.f32 %v1028_v1, %v1028_v1  ;;  %vm406_vm10 = vcmask 1043456   ;;  %s791_s20 = sshll.u32 %s1339_s4, 4  ;;  %s792_s20 = int_to_ptr.hbm [resolvable:$true] %s791_s20 }
   0xe   :  { %v1038_v6 = vld [vmem:[#allocation2 + $0xa0] sm:$0xff]  ;;  %v1042_v8 = vld [vmem:[#allocation2 + $0x8] sm:$0xff]  ;;  %v1049_v12 = vld [vmem:[#allocation2 + $0x10] sm:$0xff]  ;;  %v116_v17 = vmul.f32 %v1030_v2, %v1030_v2  ;;  %v117_v22 = vmul.f32 %v1032_v3, %v1032_v3  ;;  %v118_v23 = vmul.f32 %v1034_v4, %v1034_v4  ;;  %vm387_vm11 = vcmask 195584  }
   0xf   :  { %v1040_v7 = vld [vmem:[#allocation2] sm:$0xff]  ;;  %v92_v11 = vadd.f32 %v91_v5, %v1030_v2  ;;  %v1051_v13 = vld [vmem:[#allocation2 + $0x18] sm:$0xff]  ;;  %v1063_v19 = vld [vmem:[#allocation2 + $0x30] sm:$0xff]  ;;  %v101_v20 = vmul.f32 %v1042_v8, %v1042_v8  ;;  %v102_v21 = vmul.f32 %v1049_v12, %v1049_v12  ;;  %v96_v26 = vsel %vm77_vm0, %v1038_v6, 0.0 }
  0x10   :  { %v1053_v14 = vld [vmem:[#allocation2 + $0x20] sm:$0xff]  ;;  %v72_v15 = vadd.f32 %v1042_v8, %v1040_v7  ;;  %v100_v16 = vmul.f32 %v1040_v7, %v1040_v7  ;;  %v1061_v18 = vld [vmem:[#allocation2 + $0x98] sm:$0xff]  ;;  %v1078_v27 = vld [vmem:[#allocation2 + $0x28] sm:$0xff]  ;;  %v103_v31 = vmul.f32 %v1051_v13, %v1051_v13  ;;  %v139_v34 = vadd.f32 %v115_v10, %v114_v9 }
  0x11   :  { %v1073_v24 = vld [vmem:[#allocation2 + $0x38] sm:$0xff]  ;;  %v93_v25 = vadd.f32 %v92_v11, %v1032_v3  ;;  %v119_v29 = vmul.f32 %v1061_v18, %v1061_v18  ;;  %v1083_v30 = vld [vmem:[#allocation2 + $0x40] sm:$0xff]  ;;  %v104_v32 = vmul.f32 %v1053_v14, %v1053_v14  ;;  %v1089_v35 = vld [vmem:[#allocation2 + $0x48] sm:$0xff]  ;;  %v78_v38 = vsel %vm77_vm0, %v1063_v19, 0.0 }
  0x12   :  { %v73_v28 = vadd.f32 %v72_v15, %v1049_v12  ;;  %v121_v33 = vadd.f32 %v101_v20, %v100_v16  ;;  %v82_v39 = vadd.f32 %v1083_v30, %v1073_v24  ;;  %v105_v40 = vmul.f32 %v1078_v27, %v1078_v27  ;;  %v1101_v44 = vld [vmem:[#allocation2 + $0x50] sm:$0xff]  ;;  %v1110_v52 = vld [vmem:[#allocation2 + $0x58] sm:$0xff]  ;;  %v1119_v61 = vld [vmem:[#allocation2 + $0x60] sm:$0xff] }
  0x13   :  { %v94_v36 = vadd.f32 %v93_v25, %v1034_v4  ;;  %v106_v41 = vmul.f32 %v1063_v19, %v1063_v19  ;;  %v140_v43 = vadd.f32 %v139_v34, %v116_v17  ;;  %v107_v48 = vmul.f32 %v1073_v24, %v1073_v24  ;;  %v1121_v63 = vld [vmem:[#allocation2 + $0x68] sm:$0xff] }
  0x14   :  { %v74_v37 = vadd.f32 %v73_v28, %v1051_v13  ;;  %v122_v42 = vadd.f32 %v121_v33, %v102_v21  ;;  %v83_v47 = vadd.f32 %v82_v39, %v1089_v35  ;;  %v120_v50 = vmul.f32 %v1038_v6, %v1038_v6 }
  0x15   :  { %v95_v45 = vadd.f32 %v94_v36, %v1061_v18  ;;  %v141_v51 = vadd.f32 %v140_v43, %v117_v22  ;;  %v108_v53 = vmul.f32 %v1083_v30, %v1083_v30  ;;  %v109_v57 = vmul.f32 %v1089_v35, %v1089_v35 }
  0x16   :  { %v75_v46 = vadd.f32 %v74_v37, %v1053_v14  ;;  %v123_v49 = vadd.f32 %v122_v42, %v103_v31  ;;  %v84_v56 = vadd.f32 %v83_v47, %v1101_v44  ;;  %v126_v59 = vsel %vm77_vm0, %v106_v41, 0.0 }
  0x17   :  { %v97_v54 = vadd.f32 %v96_v26, %v95_v45  ;;  %v142_v60 = vadd.f32 %v141_v51, %v118_v23  ;;  %v110_v9 = vmul.f32 %v1101_v44, %v1101_v44  ;;  %v130_v10 = vadd.f32 %v108_v53, %v107_v48 }
  0x18   :  { %v76_v55 = vadd.f32 %v75_v46, %v1078_v27  ;;  %v124_v58 = vadd.f32 %v123_v49, %v104_v32  ;;  %v85_v5 = vadd.f32 %v84_v56, %v1110_v52  ;;  %v144_v16 = vsel %vm77_vm0, %v120_v50, 0.0 }
  0x19   :  { %98 = vadd.xlane.f32.xlu0 %v97_v54  ;;  %v143_v15 = vadd.f32 %v142_v60, %v119_v29  ;;  %v111_v20 = vmul.f32 %v1110_v52, %v1110_v52  ;;  %v131_v21 = vadd.f32 %v130_v10, %v109_v57  ;;  %v87_v23 = vsel %vm77_vm0, %v1121_v63, 0.0 }
  0x1a   :  { %v79_v62 = vadd.f32 %v78_v38, %v76_v55  ;;  %v125_v11 = vadd.f32 %v124_v58, %v105_v40  ;;  %v86_v17 = vadd.f32 %v85_v5, %v1119_v61  ;;  %v113_v25 = vmul.f32 %v1121_v63, %v1121_v63 }
  0x1b   :  { %v145_v26 = vadd.f32 %v144_v16, %v143_v15  ;;  %v112_v28 = vmul.f32 %v1119_v61, %v1119_v61  ;;  %v132_v29 = vadd.f32 %v131_v21, %v110_v9  ;;  %v985_v45 = vmov 0  }
  0x1c   :  { %80 = vadd.xlane.f32.xlu1 %v79_v62  ;;  %v127_v22 = vadd.f32 %v126_v59, %v125_v11  ;;  %v88_v31 = vadd.f32 %v87_v23, %v86_v17  ;;  %v135_v33 = vsel %vm77_vm0, %v113_v25, 0.0  ;;  %891 = vset.pattern.permute.xlu0 %v985_v45  ;;  %v193_v25 = vld [vmem:[%s1337_s2] sm:$0xff] }
  0x1d   :  { %v133_v32 = vadd.f32 %v132_v29, %v111_v20  ;;  %892 = vset.pattern.permute.xlu1 %v985_v45 }
  0x1e   :  { %128 = vadd.xlane.f32.xlu2 %v127_v22 }
  0x1f   :  { %v134_v34 = vadd.f32 %v133_v32, %v112_v28 }
  0x21   :  { %146 = vadd.xlane.f32.xlu0 %v145_v26  ;;  %v136_v36 = vadd.f32 %v135_v33, %v134_v34  ;;  %v195_v33 = vld [vmem:[%s1337_s2 + $0x10] sm:$0xff] }
  0x24   :  { %89 = vadd.xlane.f32.xlu1 %v88_v31 }
  0x26   :  { %137 = vadd.xlane.f32.xlu2 %v136_v36 }
  0x8c   :  { %v99_v37 = vpop.xlane.xlu0 %98 }
  0x8d   :  { %v150_v39 = vmul.f32 0.0012755102, %v99_v37 }
  0x8f   :  { %v81_v38 = vpop.xlane.xlu1 %80  ;;  %v156_v46 = vmul.f32 %v150_v39, %v150_v39 }
  0x90   :  { %v148_v40 = vmul.f32 0.0012755102, %v81_v38 }
  0x91   :  { %v129_v42 = vpop.xlane.xlu2 %128 }
  0x92   :  { %v154_v41 = vmul.f32 %v148_v40, %v148_v40  ;;  %v151_v43 = vmul.f32 0.0012755102, %v129_v42 }
  0x94   :  { %v157_v47 = vsub.f32 %v151_v43, %v154_v41  ;;  %v147_v48 = vpop.xlane.xlu0 %146 }
  0x95   :  { %v153_v49 = vmul.f32 0.0012755102, %v147_v48 }
  0x96   :  { %v160_v50 = vadd.f32 0.001, %v157_v47 }
  0x97   :  { %v90_v51 = vpop.xlane.xlu1 %89  ;;  %v159_v53 = vsub.f32 %v153_v49, %v156_v46  ;;  %v194_v46 = vld [vmem:[%s1337_s2 + $0x8] sm:$0xff] }
  0x98   :  { %v149_v54 = vmul.f32 0.0012755102, %v90_v51  ;;  %897 = vrsqrt.f32 %v160_v50  ;;  %vm169_vm2 = vweird.f32 %v160_v50 }
  0x99   :  { %v162_v55 = vadd.f32 0.001, %v159_v53  ;;  %v138_v57 = vpop.xlane.xlu2 %137 }
  0x9a   :  { %v155_v56 = vmul.f32 %v149_v54, %v149_v54  ;;  %v152_v58 = vmul.f32 0.0012755102, %v138_v57 }
  0x9b   :  { %899 = vrsqrt.f32 %v162_v55  ;;  %vm189_vm5 = vweird.f32 %v162_v55 }
  0x9c   :  { %v158_v59 = vsub.f32 %v152_v58, %v155_v56 }
  0x9e   :  { %v898_v60 = vpop.eup %897  ;;  %v161_v62 = vadd.f32 0.001, %v158_v59 }
  0x9f   :  { %v164_v5 = vmul.f32 %v898_v60, %v160_v50  ;;  %vm170_vm1 = vweird.f32 %v898_v60 }
  0xa0   :  { %901 = vrsqrt.f32 %v161_v62  ;;  %vm171_vm3 = vmor %vm169_vm2, %vm170_vm1  ;;  %vm179_vm7 = vweird.f32 %v161_v62 }
  0xa1   :  { %v900_v9 = vpop.eup %899  ;;  %v165_v10 = vmul.f32 %v898_v60, %v164_v5  ;;  %v304_v5 = vld [vmem:[#allocation5 + $0x78] sm:$0xff] }
  0xa2   :  { %v184_v11 = vmul.f32 %v900_v9, %v162_v55  ;;  %vm190_vm4 = vweird.f32 %v900_v9 }
  0xa3   :  { %v166_v15 = vmul.f32 0.5, %v165_v10  ;;  %vm191_vm6 = vmor %vm189_vm5, %vm190_vm4 }
  0xa4   :  { %v185_v16 = vmul.f32 %v900_v9, %v184_v11 }
  0xa5   :  { %v167_v17 = vsub.f32 1.5, %v166_v15 }
  0xa6   :  { %v902_v20 = vpop.eup %901  ;;  %v186_v21 = vmul.f32 0.5, %v185_v16 }
  0xa7   :  { %v174_v22 = vmul.f32 %v902_v20, %v161_v62  ;;  %v168_v23 = vmul.f32 %v898_v60, %v167_v17  ;;  %vm180_vm8 = vweird.f32 %v902_v20  ;;  %v303_v62 = vld [vmem:[#allocation5 + $0x70] sm:$0xff] }
  0xa8   :  { %v187_v26 = vsub.f32 1.5, %v186_v21  ;;  %vm181_vm9 = vmor %vm179_vm7, %vm180_vm8 }
  0xa9   :  { %v175_v28 = vmul.f32 %v902_v20, %v174_v22  ;;  %v172_v29 = vsel %vm171_vm3, %v898_v60, %v168_v23 }
  0xaa   :  { %v196_v31 = vmul.f32 %v193_v25, %v172_v29  ;;  %v188_v32 = vmul.f32 %v900_v9, %v187_v26  ;;  %v306_v29 = vld [vmem:[#allocation5 + $0x88] sm:$0xff] }
  0xab   :  { %v176_v34 = vmul.f32 0.5, %v175_v28 }
  0xac   :  { %v199_v36 = vmul.f32 %v196_v31, %v148_v40  ;;  %v192_v37 = vsel %vm191_vm6, %v900_v9, %v188_v32  ;;  %v987_v40 = vmov 1   ;;  %v305_v9 = vld [vmem:[#allocation5 + $0x80] sm:$0xff] }
  0xad   :  { %v177_v38 = vsub.f32 1.5, %v176_v34  ;;  %v198_v41 = vmul.f32 %v195_v33, %v192_v37  ;;  %893 = vset.pattern.permute.xlu2 %v987_v40 }
  0xae   :  { %205 = vrot.lane.b32.xlu1 %v199_v36, %s986_s29 }
  0xaf   :  { %v201_v42 = vmul.f32 %v198_v41, %v150_v39  ;;  %v178_v43 = vmul.f32 %v902_v20, %v177_v38 }
  0xb1   :  { %209 = vrot.lane.b32.xlu0 %v201_v42, %s986_s29  ;;  %v182_v47 = vsel %vm181_vm9, %v902_v20, %v178_v43  ;;  %v309_v42 = vld [vmem:[#allocation5 + $0xa0] sm:$0xff] }
  0xb2   :  { %v197_v48 = vmul.f32 %v194_v46, %v182_v47  ;;  %v297_v47 = vld [vmem:[#allocation5 + $0x40] sm:$0xff] }
  0xb4   :  { %v200_v49 = vmul.f32 %v197_v48, %v149_v54 }
  0xb6   :  { %219 = vperm.xlu1 %892, %v196_v31   ;;  %207 = vrot.lane.b32.xlu2 %v200_v49, %s986_s29  ;;  %v298_v49 = vld [vmem:[#allocation5 + $0x48] sm:$0xff] }
  0xb9   :  { %229 = vperm.xlu0 %891, %v198_v41  }
  0xbe   :  { %895 = vset.pattern.permute.xlu1 %v987_v40 }
  0xc1   :  { %896 = vset.pattern.permute.xlu0 %v987_v40 }
 0x110   :  { %v208_v50 = vpop.permute.xlu2 %207 }
 0x111   :  { %v215_v51 = vsub.f32 %v194_v46, %v208_v50  ;;  %v296_v46 = vld [vmem:[#allocation5 + $0x38] sm:$0xff] }
 0x113   :  { %260 = vperm.xlu0 %896, %v215_v51   ;;  %v289_v51 = vld [vmem:[#allocation5] sm:$0xff] }
 0x120   :  { %v206_v39 = vpop.permute.xlu1 %205 }
 0x121   :  { %v214_v53 = vsub.f32 %v193_v25, %v206_v39  ;;  %v290_v39 = vld [vmem:[#allocation5 + $0x8] sm:$0xff] }
 0x123   :  { %255 = vperm.xlu1 %895, %v214_v53   ;;  %v210_v55 = vpop.permute.xlu0 %209  ;;  %v291_v53 = vld [vmem:[#allocation5 + $0x10] sm:$0xff] }
 0x124   :  { %v216_v56 = vsub.f32 %v195_v33, %v210_v55 }
 0x126   :  { %265 = vperm.xlu2 %893, %v216_v56  }
 0x128   :  { %v1175_v26 = vpop.permute.xlu1 %219 }
 0x129   :  { %v237_v40 = vmul.f32 %v1175_v26, %v1078_v27  ;;  %v238_v50 = vmul.f32 %v1175_v26, %v1063_v19 }
 0x12b   :  { %v1149_v54 = vpop.permute.xlu0 %229 }
 0x12c   :  { %v246_v57 = vmul.f32 %v1149_v54, %v1026_v0  ;;  %v247_v58 = vmul.f32 %v1149_v54, %v1028_v1  ;;  %v248_v59 = vmul.f32 %v1149_v54, %v1030_v2  ;;  %v249_v23 = vmul.f32 %v1149_v54, %v1032_v3 }
 0x12d   :  { %v251_v31 = vmul.f32 %v1149_v54, %v1061_v18  ;;  %v252_v3 = vmul.f32 %v1149_v54, %v1038_v6  ;;  %v232_v18 = vmul.f32 %v1175_v26, %v1040_v7  ;;  %v235_v7 = vmul.f32 %v1175_v26, %v1051_v13 }
 0x12e   :  { %894 = vset.pattern.permute.xlu2 %v985_v45 }
 0x12f   :  { %224 = vperm.xlu2 %894, %v197_v48   ;;  %v234_v48 = vmul.f32 %v1175_v26, %v1049_v12 }
 0x180   :  { %v1157_v60 = vpop.permute.xlu2 %265 }
 0x181   :  { %v282_v10 = vadd.f32 %v1157_v60, %v246_v57  ;;  %v283_v45 = vadd.f32 %v1157_v60, %v247_v58  ;;  %v284_v11 = vadd.f32 %v1157_v60, %v248_v59  ;;  %v285_v28 = vadd.f32 %v1157_v60, %v249_v23 }
 0x182   :  { %v287_v37 = vadd.f32 %v1157_v60, %v251_v31  ;;  %v288_v38 = vadd.f32 %v1157_v60, %v252_v3  ;;  %v1232_v3 = vld [vmem:[%s1338_s3 + $0x8] sm:$0xff] }
 0x183   :  { %v324_v15 = vadd.f32 %v303_v62, %v282_v10  ;;  %v325_v16 = vadd.f32 %v304_v5, %v283_v45  ;;  %v326_v0 = vadd.f32 %v305_v9, %v284_v11  ;;  %v327_v36 = vadd.f32 %v306_v29, %v285_v28  ;;  %v294_v28 = vld [vmem:[#allocation5 + $0x28] sm:$0xff]  ;;  %v295_v29 = vld [vmem:[#allocation5 + $0x30] sm:$0xff] }
 0x184   :  { %v330_v57 = vadd.f32 %v309_v42, %v288_v38 }
 0x185   :  { %v350_v17 = vpack.c.bf16 %v324_v15, %v324_v15  ;;  %v351_v1 = vpack.c.bf16 %v325_v16, %v325_v16  ;;  %v352_v20 = vpack.c.bf16 %v326_v0, %v326_v0  ;;  %v1190_v41 = vpop.permute.xlu0 %260  ;;  %v353_v55 = vpack.c.bf16 %v327_v36, %v327_v36  ;;  %v292_v0 = vld [vmem:[#allocation5 + $0x18] sm:$0xff] }
 0x186   :  { %v356_v16 = vpack.c.bf16 %v330_v57, %v330_v57 }
 0x187   :  { %v408_v2 = vsel %vm406_vm10, %v350_v17, 0  ;;  %v1164_v21 = vsel %vm406_vm10, %v351_v1, 0  ;;  %v1167_v22 = vsel %vm406_vm10, %v352_v20, 0  ;;  %v417_v38 = vsel %vm406_vm10, %v353_v55, 0  ;;  %v876_v55 = vld [vmem:[%s1338_s3 + $0x28] sm:$0xff] }
 0x188   :  { %434 = vmatpush.bf16.msra.mxu0 %v408_v2  ;;  %877 = vmatpush.bf16.msra.mxu3 %v408_v2 }
 0x189   :  { %879 = vmatpush.bf16.msra.mxu1 %v1164_v21  ;;  %881 = vmatpush.bf16.msra.mxu2 %v1167_v22  ;;  %v1173_v25 = vpop.permute.xlu2 %224 }
 0x18a   :  { %v239_v32 = vmul.f32 %v1173_v25, %v1073_v24  ;;  %v240_v33 = vmul.f32 %v1173_v25, %v1083_v30  ;;  %v241_v34 = vmul.f32 %v1173_v25, %v1089_v35  ;;  %v308_v24 = vld [vmem:[#allocation5 + $0x98] sm:$0xff]  ;;  %v233_v35 = vmul.f32 %v1175_v26, %v1042_v8 }
 0x18b   :  { %v329_v56 = vadd.f32 %v308_v24, %v287_v37  ;;  %v242_v12 = vmul.f32 %v1173_v25, %v1101_v44  ;;  %v244_v19 = vmul.f32 %v1173_v25, %v1119_v61  ;;  %v245_v9 = vmul.f32 %v1173_v25, %v1121_v63  ;;  %v299_v63 = vld [vmem:[#allocation5 + $0x50] sm:$0xff]  ;;  %v302_v37 = vld [vmem:[#allocation5 + $0x68] sm:$0xff] }
 0x18c   :  { %v275_v30 = vadd.f32 %v1190_v41, %v239_v32  ;;  %v276_v43 = vadd.f32 %v1190_v41, %v240_v33  ;;  %v277_v6 = vadd.f32 %v1190_v41, %v241_v34  ;;  %v301_v32 = vld [vmem:[#allocation5 + $0x60] sm:$0xff]  ;;  %v1227_v34 = vld [vmem:[%s1338_s3] sm:$0xff] }
 0x18d   :  { %v355_v15 = vpack.c.bf16 %v329_v56, %v329_v56  ;;  %v278_v23 = vadd.f32 %v1190_v41, %v242_v12  ;;  %v280_v31 = vadd.f32 %v1190_v41, %v244_v19  ;;  %v281_v33 = vadd.f32 %v1190_v41, %v245_v9 }
 0x18e   :  { %v317_v59 = vadd.f32 %v296_v46, %v275_v30  ;;  %v318_v62 = vadd.f32 %v297_v47, %v276_v43  ;;  %v319_v5 = vadd.f32 %v298_v49, %v277_v6  ;;  %v426_v30 = vsel %vm406_vm10, %v356_v16, 0 }
 0x18f   :  { %v423_v42 = vsel %vm406_vm10, %v355_v15, 0  ;;  %v322_v43 = vadd.f32 %v301_v32, %v280_v31  ;;  %v323_v6 = vadd.f32 %v302_v37, %v281_v33 }
 0x195   :  { %v1207_v8 = vpop.permute.xlu1 %255 }
 0x196   :  { %v268_v58 = vadd.f32 %v1207_v8, %v232_v18  ;;  %v269_v13 = vadd.f32 %v1207_v8, %v233_v35  ;;  %v270_v27 = vadd.f32 %v1207_v8, %v234_v48  ;;  %v271_v44 = vadd.f32 %v1207_v8, %v235_v7  ;;  %v307_v7 = vld [vmem:[#allocation5 + $0x90] sm:$0xff] }
 0x197   :  { %v273_v17 = vadd.f32 %v1207_v8, %v237_v40  ;;  %v274_v1 = vadd.f32 %v1207_v8, %v238_v50  ;;  %v320_v35 = vadd.f32 %v299_v63, %v278_v23  ;;  %v250_v48 = vmul.f32 %v1149_v54, %v1034_v4  ;;  %v293_v54 = vld [vmem:[#allocation5 + $0x20] sm:$0xff] }
 0x198   :  { %v310_v10 = vadd.f32 %v289_v51, %v268_v58  ;;  %v311_v45 = vadd.f32 %v290_v39, %v269_v13  ;;  %v312_v11 = vadd.f32 %v291_v53, %v270_v27  ;;  %v313_v36 = vadd.f32 %v292_v0, %v271_v44  ;;  %v873_v39 = vld [vmem:[%s1338_s3 + $0x10] sm:$0xff] }
 0x199   :  { %v315_v18 = vadd.f32 %v294_v28, %v273_v17  ;;  %v316_v24 = vadd.f32 %v295_v29, %v274_v1  ;;  %v286_v49 = vadd.f32 %v1157_v60, %v250_v48  ;;  %v236_v50 = vmul.f32 %v1175_v26, %v1053_v14  ;;  %v300_v60 = vld [vmem:[#allocation5 + $0x58] sm:$0xff] }
 0x19a   :  { %v343_v20 = vpack.c.bf16 %v317_v59, %v310_v10  ;;  %v344_v61 = vpack.c.bf16 %v318_v62, %v311_v45  ;;  %v345_v2 = vpack.c.bf16 %v319_v5, %v312_v11  ;;  %v346_v46 = vpack.c.bf16 %v320_v35, %v313_v36 }
 0x19b   :  { %v349_v47 = vpack.c.bf16 %v323_v6, %v316_v24  ;;  %v328_v40 = vadd.f32 %v307_v7, %v286_v49  ;;  %v243_v51 = vmul.f32 %v1173_v25, %v1110_v52  ;;  %v272_v53 = vadd.f32 %v1207_v8, %v236_v50  ;;  %v875_v8 = vld [vmem:[%s1338_s3 + $0x20] sm:$0xff] }
 0x19c   :  { %435 = vmatpush.bf16.msra.mxu0 %v343_v20  ;;  %878 = vmatpush.bf16.msra.mxu3 %v343_v20 }
 0x19d   :  { %880 = vmatpush.bf16.msra.mxu1 %v344_v61  ;;  %882 = vmatpush.bf16.msra.mxu2 %v345_v2  ;;  %v354_v4 = vpack.c.bf16 %v328_v40, %v328_v40  ;;  %v314_v14 = vadd.f32 %v293_v54, %v272_v53 }
 0x19f   :  { %829 = vmatmul.msk.bf16.vlgmr.msra.gmra.mxu0 %vm387_vm11, %v1227_v34  ;;  %830 = vmatmul.msk.bf16.vlgmr.msra.gmra.mxu3 %vm387_vm11, %v1232_v3  ;;  %v420_v52 = vsel %vm406_vm10, %v354_v4, 0 }
 0x1a0   :  { %473 = vmatpush.bf16.msrb.mxu0 %v1164_v21  ;;  %551 = vmatpush.bf16.msrb.mxu3 %v417_v38  ;;  %v348_v21 = vpack.c.bf16 %v322_v43, %v315_v18 }
 0x1a1   :  { %629 = vmatpush.bf16.msrb.mxu1 %v423_v42  ;;  %668 = vmatpush.bf16.msrb.mxu2 %v426_v30 }
 0x1a2   :  { %836 = vmatmul.msk.bf16.vlgmr.msra.gmra.mxu1 %vm387_vm11, %v1232_v3  ;;  %842 = vmatmul.msk.bf16.vlgmr.msra.gmra.mxu2 %vm387_vm11, %v1232_v3 }
 0x1a4   :  { %474 = vmatpush.bf16.msrb.mxu0 %v344_v61  ;;  %552 = vmatpush.bf16.msrb.mxu3 %v346_v46 }
 0x1a5   :  { %630 = vmatpush.bf16.msrb.mxu1 %v348_v21  ;;  %669 = vmatpush.bf16.msrb.mxu2 %v349_v47 }
 0x1a8   :  { %512 = vmatpush.bf16.msra.mxu0 %v1167_v22  ;;  %v279_v22 = vadd.f32 %v1190_v41, %v243_v51  ;;  %v874_v41 = vld [vmem:[%s1338_s3 + $0x18] sm:$0xff]  ;;  %s988_s3 = smov [#allocation7]  }
 0x1a9   :  { %s789_s17 = sshll.u32 %s988_s3, 4  ;;  %s790_s17 = int_to_ptr.vmem [resolvable:$true] %s789_s17 }
 0x1aa   :  { %v321_v25 = vadd.f32 %v300_v60, %v279_v22 }
 0x1ac   :  { %513 = vmatpush.bf16.msra.mxu0 %v345_v2  ;;  %v347_v26 = vpack.c.bf16 %v321_v25, %v314_v14 }
 0x1af   :  { %831 = vmatmul.msk.bf16.gmra.mxu3 %vm387_vm11, %v873_v39  ;;  %835 = vmatmul.msk.bf16.vlgmr.msrb.gmra.mxu0 %vm387_vm11, %v1227_v34 }
 0x1b0   :  { %590 = vmatpush.bf16.msrb.mxu0 %v420_v52 }
 0x1b2   :  { %837 = vmatmul.msk.bf16.gmra.mxu1 %vm387_vm11, %v873_v39  ;;  %843 = vmatmul.msk.bf16.gmra.mxu2 %vm387_vm11, %v873_v39 }
 0x1b4   :  { %591 = vmatpush.bf16.msrb.mxu0 %v347_v26 }
 0x1bf   :  { %832 = vmatmul.msk.bf16.gmra.mxu3 %vm387_vm11, %v874_v41  ;;  %841 = vmatmul.msk.bf16.vlgmr.msra.gmra.mxu0 %vm387_vm11, %v1227_v34 }
 0x1c2   :  { %838 = vmatmul.msk.bf16.gmra.mxu1 %vm387_vm11, %v874_v41  ;;  %844 = vmatmul.msk.bf16.gmra.mxu2 %vm387_vm11, %v874_v41 }
 0x1cf   :  { %833 = vmatmul.msk.bf16.gmra.mxu3 %vm387_vm11, %v875_v8  ;;  %853 = vmatmul.msk.bf16.vlgmr.msrb.gmra.mxu0 %vm387_vm11, %v1227_v34 }
 0x1d2   :  { %839 = vmatmul.msk.bf16.gmra.mxu1 %vm387_vm11, %v875_v8  ;;  %845 = vmatmul.msk.bf16.gmra.mxu2 %vm387_vm11, %v875_v8 }
 0x1df   :  { %834 = vmatmul.msk.bf16.gmra.mxu3 %vm387_vm11, %v876_v55  ;;  %854 = vmatmul.msk.bf16.gmra.mxu0 %vm387_vm11, %v1232_v3 }
 0x1e2   :  { %840 = vmatmul.msk.bf16.gmra.mxu1 %vm387_vm11, %v876_v55  ;;  %846 = vmatmul.msk.bf16.gmra.mxu2 %vm387_vm11, %v876_v55 }
 0x1ef   :  { %847 = vmatmul.msk.bf16.vlgmr.msrb.gmra.mxu3 %vm387_vm11, %v1227_v34  ;;  %855 = vmatmul.msk.bf16.gmra.mxu0 %vm387_vm11, %v873_v39 }
 0x1f2   :  { %859 = vmatmul.msk.bf16.vlgmr.msrb.gmra.mxu1 %vm387_vm11, %v1227_v34  ;;  %865 = vmatmul.msk.bf16.vlgmr.msrb.gmra.mxu2 %vm387_vm11, %v1227_v34 }
 0x1ff   :  { %848 = vmatmul.msk.bf16.gmra.mxu3 %vm387_vm11, %v1232_v3  ;;  %856 = vmatmul.msk.bf16.gmra.mxu0 %vm387_vm11, %v874_v41 }
 0x202   :  { %860 = vmatmul.msk.bf16.gmra.mxu1 %vm387_vm11, %v1232_v3  ;;  %866 = vmatmul.msk.bf16.gmra.mxu2 %vm387_vm11, %v1232_v3 }
 0x20f   :  { %849 = vmatmul.msk.bf16.gmra.mxu3 %vm387_vm11, %v873_v39  ;;  %857 = vmatmul.msk.bf16.gmra.mxu0 %vm387_vm11, %v875_v8 }
 0x212   :  { %861 = vmatmul.msk.bf16.gmra.mxu1 %vm387_vm11, %v873_v39  ;;  %867 = vmatmul.msk.bf16.gmra.mxu2 %vm387_vm11, %v873_v39 }
 0x21c   :  { %v437_v56 = vpop.f32.mrf.mxu0 }
 0x21d   :  { %701 = vst [vmem:[#allocation7] sm:$0xff] %v437_v56 }
 0x21f   :  { %v481_v57 = vpop.f32.mrf.mxu1  ;;  %850 = vmatmul.msk.bf16.gmra.mxu3 %vm387_vm11, %v874_v41  ;;  %858 = vmatmul.msk.bf16.gmra.mxu0 %vm387_vm11, %v876_v55 }
 0x220   :  { %716 = vst [vmem:[#allocation7 + $0x78] sm:$0xff] %v481_v57 }
 0x222   :  { %862 = vmatmul.msk.bf16.gmra.mxu1 %vm387_vm11, %v874_v41  ;;  %868 = vmatmul.msk.bf16.gmra.mxu2 %vm387_vm11, %v874_v41  ;;  %v442_v12 = vpop.f32.mrf.mxu3 }
 0x223   :  { %715 = vst [vmem:[#allocation7 + $0x70] sm:$0xff] %v442_v12 }
 0x224   :  { %v439_v13 = vpop.f32.mrf.mxu0 }
 0x225   :  { %v520_v58 = vpop.f32.mrf.mxu2  ;;  %708 = vst [vmem:[#allocation7 + $0x38] sm:$0xff] %v439_v13 }
 0x226   :  { %717 = vst [vmem:[#allocation7 + $0x80] sm:$0xff] %v520_v58 }
 0x227   :  { %v483_v27 = vpop.f32.mrf.mxu1 }
 0x228   :  { %723 = vst [vmem:[#allocation7 + $0xb0] sm:$0xff] %v483_v27 }
 0x22a   :  { %v444_v19 = vpop.f32.mrf.mxu3 }
 0x22b   :  { %722 = vst [vmem:[#allocation7 + $0xa8] sm:$0xff] %v444_v19 }
 0x22c   :  { %v476_v62 = vpop.f32.mrf.mxu0 }
 0x22d   :  { %v522_v59 = vpop.f32.mrf.mxu2  ;;  %702 = vst [vmem:[#allocation7 + $0x8] sm:$0xff] %v476_v62 }
 0x22e   :  { %724 = vst [vmem:[#allocation7 + $0xb8] sm:$0xff] %v522_v59 }
 0x22f   :  { %v486_v5 = vpop.f32.mrf.mxu1  ;;  %851 = vmatmul.msk.bf16.gmra.mxu3 %vm387_vm11, %v875_v8 }
 0x230   :  { %730 = vst [vmem:[#allocation7 + $0xe8] sm:$0xff] %v486_v5 }
 0x232   :  { %863 = vmatmul.msk.bf16.gmra.mxu1 %vm387_vm11, %v875_v8  ;;  %869 = vmatmul.msk.bf16.gmra.mxu2 %vm387_vm11, %v875_v8  ;;  %v447_v9 = vpop.f32.mrf.mxu3 }
 0x233   :  { %729 = vst [vmem:[#allocation7 + $0xe0] sm:$0xff] %v447_v9 }
 0x234   :  { %v478_v45 = vpop.f32.mrf.mxu0 }
 0x235   :  { %v525_v10 = vpop.f32.mrf.mxu2  ;;  %709 = vst [vmem:[#allocation7 + $0x40] sm:$0xff] %v478_v45 }
 0x236   :  { %731 = vst [vmem:[#allocation7 + $0xf0] sm:$0xff] %v525_v10 }
 0x237   :  { %v488_v11 = vpop.f32.mrf.mxu1 }
 0x238   :  { %737 = vst [vmem:[#allocation7 + $0x120] sm:$0xff] %v488_v11 }
 0x23a   :  { %v449_v44 = vpop.f32.mrf.mxu3 }
 0x23b   :  { %736 = vst [vmem:[#allocation7 + $0x118] sm:$0xff] %v449_v44 }
 0x23c   :  { %v515_v16 = vpop.f32.mrf.mxu0 }
 0x23d   :  { %v527_v15 = vpop.f32.mrf.mxu2  ;;  %703 = vst [vmem:[#allocation7 + $0x10] sm:$0xff] %v515_v16 }
 0x23e   :  { %738 = vst [vmem:[#allocation7 + $0x128] sm:$0xff] %v527_v15 }
 0x23f   :  { %v491_v0 = vpop.f32.mrf.mxu1  ;;  %852 = vmatmul.msk.bf16.gmra.mxu3 %vm387_vm11, %v876_v55 }
 0x240   :  { %744 = vst [vmem:[#allocation7 + $0x158] sm:$0xff] %v491_v0 }
 0x242   :  { %864 = vmatmul.msk.bf16.gmra.mxu1 %vm387_vm11, %v876_v55  ;;  %870 = vmatmul.msk.bf16.gmra.mxu2 %vm387_vm11, %v876_v55  ;;  %v452_v17 = vpop.f32.mrf.mxu3 }
 0x243   :  { %743 = vst [vmem:[#allocation7 + $0x150] sm:$0xff] %v452_v17 }
 0x244   :  { %v517_v20 = vpop.f32.mrf.mxu0 }
 0x245   :  { %v530_v1 = vpop.f32.mrf.mxu2  ;;  %710 = vst [vmem:[#allocation7 + $0x48] sm:$0xff] %v517_v20 }
 0x246   :  { %745 = vst [vmem:[#allocation7 + $0x160] sm:$0xff] %v530_v1 }
 0x247   :  { %v493_v61 = vpop.f32.mrf.mxu1 }
 0x248   :  { %751 = vst [vmem:[#allocation7 + $0x190] sm:$0xff] %v493_v61 }
 0x24a   :  { %v454_v2 = vpop.f32.mrf.mxu3 }
 0x24b   :  { %750 = vst [vmem:[#allocation7 + $0x188] sm:$0xff] %v454_v2 }
 0x24c   :  { %v593_v28 = vpop.f32.mrf.mxu0 }
 0x24d   :  { %v532_v23 = vpop.f32.mrf.mxu2  ;;  %705 = vst [vmem:[#allocation7 + $0x20] sm:$0xff] %v593_v28 }
 0x24e   :  { %752 = vst [vmem:[#allocation7 + $0x198] sm:$0xff] %v532_v23 }
 0x24f   :  { %v496_v29 = vpop.f32.mrf.mxu1 }
 0x250   :  { %758 = vst [vmem:[#allocation7 + $0x1c8] sm:$0xff] %v496_v29 }
 0x252   :  { %v457_v63 = vpop.f32.mrf.mxu3 }
 0x253   :  { %757 = vst [vmem:[#allocation7 + $0x1c0] sm:$0xff] %v457_v63 }
 0x254   :  { %v595_v32 = vpop.f32.mrf.mxu0 }
 0x255   :  { %v535_v31 = vpop.f32.mrf.mxu2  ;;  %712 = vst [vmem:[#allocation7 + $0x58] sm:$0xff] %v595_v32 }
 0x256   :  { %759 = vst [vmem:[#allocation7 + $0x1d0] sm:$0xff] %v535_v31 }
 0x257   :  { %v498_v33 = vpop.f32.mrf.mxu1 }
 0x258   :  { %765 = vst [vmem:[#allocation7 + $0x200] sm:$0xff] %v498_v33 }
 0x25a   :  { %v459_v34 = vpop.f32.mrf.mxu3 }
 0x25b   :  { %764 = vst [vmem:[#allocation7 + $0x1f8] sm:$0xff] %v459_v34 }
 0x25c   :  { %v598_v36 = vpop.f32.mrf.mxu0 }
 0x25d   :  { %v537_v3 = vpop.f32.mrf.mxu2  ;;  %719 = vst [vmem:[#allocation7 + $0x90] sm:$0xff] %v598_v36 }
 0x25e   :  { %766 = vst [vmem:[#allocation7 + $0x208] sm:$0xff] %v537_v3 }
 0x25f   :  { %v501_v37 = vpop.f32.mrf.mxu1 }
 0x260   :  { %772 = vst [vmem:[#allocation7 + $0x238] sm:$0xff] %v501_v37 }
 0x262   :  { %v462_v38 = vpop.f32.mrf.mxu3 }
 0x263   :  { %771 = vst [vmem:[#allocation7 + $0x230] sm:$0xff] %v462_v38 }
 0x264   :  { %v600_v24 = vpop.f32.mrf.mxu0 }
 0x265   :  { %v540_v18 = vpop.f32.mrf.mxu2  ;;  %726 = vst [vmem:[#allocation7 + $0xc8] sm:$0xff] %v600_v24 }
 0x266   :  { %773 = vst [vmem:[#allocation7 + $0x240] sm:$0xff] %v540_v18 }
 0x267   :  { %v503_v42 = vpop.f32.mrf.mxu1 }
 0x268   :  { %779 = vst [vmem:[#allocation7 + $0x270] sm:$0xff] %v503_v42 }
 0x26a   :  { %v464_v30 = vpop.f32.mrf.mxu3 }
 0x26b   :  { %778 = vst [vmem:[#allocation7 + $0x268] sm:$0xff] %v464_v30 }
 0x26c   :  { %v603_v43 = vpop.f32.mrf.mxu0 }
 0x26d   :  { %v542_v35 = vpop.f32.mrf.mxu2  ;;  %733 = vst [vmem:[#allocation7 + $0x100] sm:$0xff] %v603_v43 }
 0x26e   :  { %780 = vst [vmem:[#allocation7 + $0x278] sm:$0xff] %v542_v35 }
 0x26f   :  { %v632_v6 = vpop.f32.mrf.mxu1 }
 0x270   :  { %706 = vst [vmem:[#allocation7 + $0x28] sm:$0xff] %v632_v6 }
 0x272   :  { %v554_v46 = vpop.f32.mrf.mxu3 }
 0x273   :  { %704 = vst [vmem:[#allocation7 + $0x18] sm:$0xff] %v554_v46 }
 0x274   :  { %v605_v47 = vpop.f32.mrf.mxu0 }
 0x275   :  { %v671_v21 = vpop.f32.mrf.mxu2  ;;  %740 = vst [vmem:[#allocation7 + $0x138] sm:$0xff] %v605_v47 }
 0x276   :  { %707 = vst.msk [vmem:[#allocation7 + $0x30] sm:$0xff] %vm77_vm0, %v671_v21 }
 0x277   :  { %v634_v48 = vpop.f32.mrf.mxu1 }
 0x278   :  { %713 = vst [vmem:[#allocation7 + $0x60] sm:$0xff] %v634_v48 }
 0x27a   :  { %v556_v49 = vpop.f32.mrf.mxu3 }
 0x27b   :  { %711 = vst [vmem:[#allocation7 + $0x50] sm:$0xff] %v556_v49 }
 0x27c   :  { %v608_v40 = vpop.f32.mrf.mxu0 }
 0x27d   :  { %v673_v7 = vpop.f32.mrf.mxu2  ;;  %747 = vst [vmem:[#allocation7 + $0x170] sm:$0xff] %v608_v40 }
 0x27e   :  { %714 = vst.msk [vmem:[#allocation7 + $0x68] sm:$0xff] %vm77_vm0, %v673_v7 }
 0x27f   :  { %v637_v50 = vpop.f32.mrf.mxu1 }
 0x280   :  { %720 = vst [vmem:[#allocation7 + $0x98] sm:$0xff] %v637_v50 }
 0x282   :  { %v559_v51 = vpop.f32.mrf.mxu3 }
 0x283   :  { %718 = vst [vmem:[#allocation7 + $0x88] sm:$0xff] %v559_v51 }
 0x284   :  { %v610_v53 = vpop.f32.mrf.mxu0 }
 0x285   :  { %v676_v39 = vpop.f32.mrf.mxu2  ;;  %754 = vst [vmem:[#allocation7 + $0x1a8] sm:$0xff] %v610_v53 }
 0x286   :  { %721 = vst.msk [vmem:[#allocation7 + $0xa0] sm:$0xff] %vm77_vm0, %v676_v39 }
 0x287   :  { %v639_v4 = vpop.f32.mrf.mxu1 }
 0x288   :  { %727 = vst [vmem:[#allocation7 + $0xd0] sm:$0xff] %v639_v4 }
 0x28a   :  { %v561_v54 = vpop.f32.mrf.mxu3 }
 0x28b   :  { %725 = vst [vmem:[#allocation7 + $0xc0] sm:$0xff] %v561_v54 }
 0x28c   :  { %v613_v60 = vpop.f32.mrf.mxu0 }
 0x28d   :  { %v678_v22 = vpop.f32.mrf.mxu2  ;;  %761 = vst [vmem:[#allocation7 + $0x1e0] sm:$0xff] %v613_v60 }
 0x28e   :  { %728 = vst.msk [vmem:[#allocation7 + $0xd8] sm:$0xff] %vm77_vm0, %v678_v22 }
 0x28f   :  { %v642_v14 = vpop.f32.mrf.mxu1 }
 0x290   :  { %734 = vst [vmem:[#allocation7 + $0x108] sm:$0xff] %v642_v14 }
 0x292   :  { %v564_v52 = vpop.f32.mrf.mxu3 }
 0x293   :  { %732 = vst [vmem:[#allocation7 + $0xf8] sm:$0xff] %v564_v52 }
 0x294   :  { %v615_v26 = vpop.f32.mrf.mxu0 }
 0x295   :  { %v681_v25 = vpop.f32.mrf.mxu2  ;;  %768 = vst [vmem:[#allocation7 + $0x218] sm:$0xff] %v615_v26 }
 0x296   :  { %735 = vst.msk [vmem:[#allocation7 + $0x110] sm:$0xff] %vm77_vm0, %v681_v25 }
 0x297   :  { %v644_v41 = vpop.f32.mrf.mxu1 }
 0x298   :  { %741 = vst [vmem:[#allocation7 + $0x140] sm:$0xff] %v644_v41 }
 0x29a   :  { %v566_v8 = vpop.f32.mrf.mxu3 }
 0x29b   :  { %739 = vst [vmem:[#allocation7 + $0x130] sm:$0xff] %v566_v8 }
 0x29c   :  { %v618_v56 = vpop.f32.mrf.mxu0 }
 0x29d   :  { %v683_v55 = vpop.f32.mrf.mxu2  ;;  %775 = vst [vmem:[#allocation7 + $0x250] sm:$0xff] %v618_v56 }
 0x29e   :  { %742 = vst.msk [vmem:[#allocation7 + $0x148] sm:$0xff] %vm77_vm0, %v683_v55 }
 0x29f   :  { %v647_v57 = vpop.f32.mrf.mxu1 }
 0x2a0   :  { %748 = vst [vmem:[#allocation7 + $0x178] sm:$0xff] %v647_v57 }
 0x2a2   :  { %v569_v12 = vpop.f32.mrf.mxu3 }
 0x2a3   :  { %746 = vst [vmem:[#allocation7 + $0x168] sm:$0xff] %v569_v12 }
 0x2a4   :  { %v620_v13 = vpop.f32.mrf.mxu0 }
 0x2a5   :  { %v686_v58 = vpop.f32.mrf.mxu2  ;;  %782 = vst [vmem:[#allocation7 + $0x288] sm:$0xff] %v620_v13 }
 0x2a6   :  { %749 = vst.msk [vmem:[#allocation7 + $0x180] sm:$0xff] %vm77_vm0, %v686_v58 }
 0x2a7   :  { %v649_v27 = vpop.f32.mrf.mxu1 }
 0x2a8   :  { %755 = vst [vmem:[#allocation7 + $0x1b0] sm:$0xff] %v649_v27 }
 0x2aa   :  { %v571_v19 = vpop.f32.mrf.mxu3 }
 0x2ab   :  { %753 = vst [vmem:[#allocation7 + $0x1a0] sm:$0xff] %v571_v19 }
 0x2ad   :  { %v688_v59 = vpop.f32.mrf.mxu2 }
 0x2ae   :  { %756 = vst.msk [vmem:[#allocation7 + $0x1b8] sm:$0xff] %vm77_vm0, %v688_v59 }
 0x2af   :  { %v652_v62 = vpop.f32.mrf.mxu1 }
 0x2b0   :  { %762 = vst [vmem:[#allocation7 + $0x1e8] sm:$0xff] %v652_v62 }
 0x2b2   :  { %v574_v5 = vpop.f32.mrf.mxu3 }
 0x2b3   :  { %760 = vst [vmem:[#allocation7 + $0x1d8] sm:$0xff] %v574_v5 }
 0x2b5   :  { %v691_v9 = vpop.f32.mrf.mxu2 }
 0x2b6   :  { %763 = vst.msk [vmem:[#allocation7 + $0x1f0] sm:$0xff] %vm77_vm0, %v691_v9 }
 0x2b7   :  { %v654_v10 = vpop.f32.mrf.mxu1 }
 0x2b8   :  { %769 = vst [vmem:[#allocation7 + $0x220] sm:$0xff] %v654_v10 }
 0x2ba   :  { %v576_v45 = vpop.f32.mrf.mxu3 }
 0x2bb   :  { %767 = vst [vmem:[#allocation7 + $0x210] sm:$0xff] %v576_v45 }
 0x2bd   :  { %v693_v11 = vpop.f32.mrf.mxu2 }
 0x2be   :  { %770 = vst.msk [vmem:[#allocation7 + $0x228] sm:$0xff] %vm77_vm0, %v693_v11 }
 0x2bf   :  { %v657_v44 = vpop.f32.mrf.mxu1 }
 0x2c0   :  { %776 = vst [vmem:[#allocation7 + $0x258] sm:$0xff] %v657_v44 }
 0x2c2   :  { %v579_v15 = vpop.f32.mrf.mxu3 }
 0x2c3   :  { %774 = vst [vmem:[#allocation7 + $0x248] sm:$0xff] %v579_v15 }
 0x2c5   :  { %v696_v16 = vpop.f32.mrf.mxu2 }
 0x2c6   :  { %777 = vst.msk [vmem:[#allocation7 + $0x260] sm:$0xff] %vm77_vm0, %v696_v16 }
 0x2c7   :  { %v659_v0 = vpop.f32.mrf.mxu1 }
 0x2c8   :  { %783 = vst [vmem:[#allocation7 + $0x290] sm:$0xff] %v659_v0 }
 0x2ca   :  { %v581_v17 = vpop.f32.mrf.mxu3 }
 0x2cb   :  { %781 = vst [vmem:[#allocation7 + $0x280] sm:$0xff] %v581_v17 }
 0x2cd   :  { %v698_v1 = vpop.f32.mrf.mxu2 }
 0x2ce   :  { %784 = vst.msk [vmem:[#allocation7 + $0x298] sm:$0xff] %vm77_vm0, %v698_v1 }
 0x2cf   :  { %797 = dma.vmem_to_hbm [thread:$0]  %s790_s17, 10752, %s792_s20, [#allocation4], %s982_s23, %s982_s23, %s983_s24  }
 0x2d0   :  { %979 = dma.done.wait [#allocation4], 10752  }
 0x2d1   :  { %980 = vsyncadd [#allocation4], 4294956544 }
 0x2d2   :  { %802 = vsyncpa [#allocation3], 1 }
 0x2d3   :  { %803 = vsyncpa [#allocation6], 1 }
 0x2d4   :  { %804 = vsyncpa [#allocation4], 1 }

</bundles_post_ra>
